<compile_context>
chip_gen: v7x
topology: tpu7x:2x2x1
jax: 0.10.0
libtpu: 0.0.40
codegen_flags: <defaults>
</compile_context>

<pallas_src>
import functools

import jax
import jax.numpy as jnp
from jax import lax
from jax.experimental import pallas as pl
from jax.experimental.pallas import tpu as pltpu

_EPS = 1e-8          # torch.nn.CosineSimilarity default eps
_EPS2 = _EPS * _EPS


def _round_up(x, m):
    return ((x + m - 1) // m) * m


def _choose_pack(rows, d):
    """Largest lane-packing factor k with k*d a multiple of 128 (lane-dense),
    k*d <= 1024, and k | rows so the (rows, d)->(rows/k, k*d) reshape is a free
    bitcast (no HBM copy).  Falls back to any k | rows, then k=1."""
    for k in (16, 8, 4, 2, 1):
        if k * d <= 1024 and (k * d) % 128 == 0 and rows % k == 0:
            return k
    for k in (16, 8, 4, 2, 1):
        if k * d <= 1024 and rows % k == 0:
            return k
    return 1


def _make_kernel(n_valid, tile, steps_per_core, k, d, need_mask):
    kd = k * d

    def kernel(p_ref, g_ref, out_ref, acc_ref):
        c = pl.program_id(0)      # core-parallel axis
        i = pl.program_id(1)      # sequential (arbitrary) axis

        @pl.when(i == 0)
        def _init():
            acc_ref[...] = jnp.zeros_like(acc_ref)

        p = p_ref[...].astype(jnp.float32)     # (tile, kd), lane-dense
        g = g_ref[...].astype(jnp.float32)

        if need_mask:
            # Zero packed rows past the end of the data (ragged last block and
            # redundant/clamped core steps).  Pure select — no arithmetic is
            # done on garbage VMEM, so no NaN/Inf can leak into the sum.
            row0 = (c * steps_per_core + i) * tile
            rows = row0 + lax.broadcasted_iota(jnp.int32, (tile, 1), 0)
            valid = rows < n_valid
            p = jnp.where(valid, p, 0.0)
            g = jnp.where(valid, g, 0.0)

        # Static 0/1 segment-sum matrix built in-kernel: seg[r, j] = 1 iff lane r
        # belongs to D-chunk j.  Right-multiplying sums each D-chunk.
        r_idx = lax.broadcasted_iota(jnp.int32, (kd, k), 0)
        c_idx = lax.broadcasted_iota(jnp.int32, (kd, k), 1)
        seg = ((r_idx >= c_idx * d) & (r_idx < (c_idx + 1) * d)).astype(jnp.float32)

        # Segmented reductions over each D-chunk on the (otherwise idle) MXU.
        dot = jnp.dot(p * g, seg, preferred_element_type=jnp.float32)   # (tile, k)
        pp = jnp.dot(p * p, seg, preferred_element_type=jnp.float32)    # (tile, k)
        gg = jnp.dot(g * g, seg, preferred_element_type=jnp.float32)    # (tile, k)

        # Per-factor clamping: matches torch and avoids f32 overflow of pp*gg.
        cos = (dot
               * lax.rsqrt(jnp.maximum(pp, _EPS2))
               * lax.rsqrt(jnp.maximum(gg, _EPS2)))                     # (tile, k)

        # Deferred reduction: per-step just a VPU add; masked rows contribute 0.
        acc_ref[...] += cos

        @pl.when(i == steps_per_core - 1)
        def _finalize():
            out_ref[...] = jnp.sum(acc_ref[...]).reshape(1, 1, 1)

    return kernel


def cosine_similarity_loss(pred, gt, *, max_tile_rows=None):
    """pred, gt: (B, N, D).  Returns scalar f32 equal to
    nn.CosineSimilarity(dim=2)(pred, gt).mean(1).mean(0)."""
    assert pred.shape == gt.shape and pred.ndim == 3
    B, N, D = pred.shape
    R = B * N
    itemsize = jnp.dtype(pred.dtype).itemsize

    # --- Lane packing: fold k rows into one (k*D)-wide packed row (free reshape). ---
    k = _choose_pack(R, D)
    kd = k * D
    n_packed = R // k                    # valid packed rows (k divides R exactly)

    p_packed = pred.reshape(n_packed, kd)
    g_packed = gt.reshape(n_packed, kd)

    # Sub-32-bit friendly alignment for the sublane (row) dimension of blocks.
    align = {4: 8, 2: 16, 1: 32}.get(itemsize, 8)

    # Tiny inputs only: pad to `align` packed rows (O(align) copy, never the
    # full array) so the sublane dim stays MXU/DMA friendly.
    n_rows = n_packed
    if n_rows < align:
        extra = align - n_rows
        p_packed = jnp.pad(p_packed, ((0, extra), (0, 0)))
        g_packed = jnp.pad(g_packed, ((0, extra), (0, 0)))
        n_rows = align

    # --- Tile sizing under an explicit per-core VMEM working-set budget:
    #   2 inputs x 2 pipeline buffers x tile*kd*itemsize     (DMA blocks)
    # + ~7     x tile*kd*4                                   (f32 temporaries)
    # kept under ~32 MiB so it fits v7x's 64 MiB physical VMEM with headroom,
    # while still giving ~2-3 MiB DMA blocks on every generation.
    budget_bytes = 32 * 1024 * 1024
    per_elem_bytes = 4 * itemsize + 28
    budget_elems = budget_bytes // per_elem_bytes
    tile_budget = max(align, (budget_elems // kd) // align * align)
    if max_tile_rows is not None:                       # test hook
        tile_budget = min(tile_budget, max(align, (max_tile_rows // align) * align))

    per_core_rows = -(-n_rows // 2)                     # split rows across 2 TCs
    tile = min(tile_budget, _round_up(per_core_rows, align))
    if tile >= n_rows:
        tile = n_rows                                   # single full-extent block

    nblocks = -(-n_rows // tile)
    steps_per_core = -(-nblocks // 2)
    # Mask needed whenever the grid over-covers the valid packed rows.
    need_mask = (2 * steps_per_core * tile) != n_packed

    if 2 * steps_per_core > nblocks:
        # Redundant steps re-read the last in-bounds block (clamped index) and
        # are fully zeroed by the in-kernel mask -> no OOB DMA, no double count.
        def in_index(c, i):
            return (jnp.minimum(c * steps_per_core + i, nblocks - 1), 0)
    else:
        def in_index(c, i):
            return (c * steps_per_core + i, 0)

    kernel = _make_kernel(n_packed, tile, steps_per_core, k, D, need_mask)

    cost = pl.CostEstimate(
        flops=9 * R * D,
        transcendentals=2 * R,
        bytes_accessed=2 * R * D * itemsize + 2 * 4,
    )

    partials = pl.pallas_call(
        kernel,
        out_shape=jax.ShapeDtypeStruct((2, 1, 1), jnp.float32),
        grid=(2, steps_per_core),
        in_specs=[
            pl.BlockSpec((tile, kd), in_index),
            pl.BlockSpec((tile, kd), in_index),
        ],
        out_specs=pl.BlockSpec((1, 1, 1), lambda c, i: (c, 0, 0)),
        scratch_shapes=[pltpu.VMEM((tile, k), jnp.float32)],
        compiler_params=pltpu.CompilerParams(
            dimension_semantics=("parallel", "arbitrary"),
            vmem_limit_bytes=48 * 1024 * 1024,
        ),
        cost_estimate=cost,
    )(p_packed, g_packed)

    return partials.sum() / jnp.float32(R)


def _reference(pred, gt):
    p = pred.astype(jnp.float32)
    g = gt.astype(jnp.float32)
    dot = jnp.sum(p * g, axis=2)
    pn = jnp.maximum(jnp.sqrt(jnp.sum(p * p, axis=2)), _EPS)
    gn = jnp.maximum(jnp.sqrt(jnp.sum(g * g, axis=2)), _EPS)
    return (dot / (pn * gn)).mean(axis=1).mean(axis=0)


if __name__ == "__main__":
    # Case 1: the module's nominal small shape (B, N, D) = (2, 8, 32).
    kp, kg = jax.random.split(jax.random.PRNGKey(0))
    pred = jax.random.normal(kp, (2, 8, 32), dtype=jnp.float32)
    gt = jax.random.normal(kg, (2, 8, 32), dtype=jnp.float32)
    out = jax.block_until_ready(jax.jit(cosine_similarity_loss)(pred, gt))
    ref = _reference(pred, gt)
    assert jnp.allclose(out, ref, atol=1e-5, rtol=1e-5), (out, ref)

    # Case 2: row count with no lane-packing divisor (k=1 fallback), both grid
    # "cores" active, ragged last block handled by in-kernel masking (no pad).
    kp2, kg2 = jax.random.split(jax.random.PRNGKey(1))
    pred2 = jax.random.normal(kp2, (3, 37, 32), dtype=jnp.float32)
    gt2 = jax.random.normal(kg2, (3, 37, 32), dtype=jnp.float32)
    out2 = jax.block_until_ready(jax.jit(cosine_similarity_loss)(pred2, gt2))
    ref2 = _reference(pred2, gt2)
    assert jnp.allclose(out2, ref2, atol=1e-5, rtol=1e-5), (out2, ref2)

    # Case 3: forces multi-step accumulation per core plus a clamped + masked
    # redundant tail step (small tile via the test hook).
    kp3, kg3 = jax.random.split(jax.random.PRNGKey(2))
    pred3 = jax.random.normal(kp3, (2, 520, 32), dtype=jnp.float32)
    gt3 = jax.random.normal(kg3, (2, 520, 32), dtype=jnp.float32)
    small_tile = jax.jit(functools.partial(cosine_similarity_loss, max_tile_rows=8))
    out3 = jax.block_until_ready(small_tile(pred3, gt3))
    ref3 = _reference(pred3, gt3)
    assert jnp.allclose(out3, ref3, atol=1e-5, rtol=1e-5), (out3, ref3)

    print("KERNEL_OK")
</pallas_src>

<mosaic_0001>
module attributes {stable_mosaic.version = 11 : i64} {
  func.func @kernel(%arg0: i32, %arg1: i32, %arg2: memref<8x512xf32, #tpu.memory_space<vmem>>, %arg3: memref<8x512xf32, #tpu.memory_space<vmem>>, %arg4: memref<1x1x1xf32, #tpu.memory_space<vmem>>, %arg5: memref<8x16xf32, #tpu.memory_space<vmem>>) attributes {dimension_semantics = [#tpu.dimension_semantics<parallel>, #tpu.dimension_semantics<arbitrary>], iteration_bounds = array<i64: 2, 1>, scalar_prefetch = 0 : i64, scratch_operands = 1 : i64, tpu.core_type = #tpu.core_type<tc>, window_params = [{transform_indices = @transform_0, window_bounds = array<i64: 8, 512>}, {transform_indices = @transform_1, window_bounds = array<i64: 8, 512>}, {transform_indices = @transform_2, window_bounds = array<i64: 1, 1, 1>}]} {
    %c0_i32 = arith.constant 0 : i32
    %0 = arith.cmpi eq, %arg1, %c0_i32 : i32
    %1 = arith.extui %0 : i1 to i32
    %c0_i32_0 = arith.constant 0 : i32
    %2 = arith.cmpi ne, %1, %c0_i32_0 : i32
    scf.if %2 {
      %cst_19 = arith.constant 0.000000e+00 : f32
      %54 = vector.broadcast %cst_19 : f32 to vector<8x16xf32>
      %c0_20 = arith.constant 0 : index
      %c0_21 = arith.constant 0 : index
      %55 = vector.load %arg5[%c0_20, %c0_21] : memref<8x16xf32, #tpu.memory_space<vmem>>, vector<8x16xf32>
      tpu.vector_store %arg5[%c0_20, %c0_21], %54 {strides = array<i32>} : memref<8x16xf32, #tpu.memory_space<vmem>>, vector<8x16xf32>,
    } else {
    }
    %c0 = arith.constant 0 : index
    %c0_1 = arith.constant 0 : index
    %3 = vector.load %arg2[%c0, %c0_1] : memref<8x512xf32, #tpu.memory_space<vmem>>, vector<8x512xf32>
    %c0_2 = arith.constant 0 : index
    %c0_3 = arith.constant 0 : index
    %4 = vector.load %arg3[%c0_2, %c0_3] : memref<8x512xf32, #tpu.memory_space<vmem>>, vector<8x512xf32>
    %c1_i32 = arith.constant 1 : i32
    %5 = arith.muli %arg0, %c1_i32 : i32
    %6 = arith.addi %5, %arg1 : i32
    %c8_i32 = arith.constant 8 : i32
    %7 = arith.muli %6, %c8_i32 : i32
    %8 = tpu.iota {dimensions = array<i32: 0>} : vector<8x1xi32>
    %9 = vector.broadcast %7 : i32 to vector<8x1xi32>
    %10 = arith.addi %9, %8 : vector<8x1xi32>
    %c1_i32_4 = arith.constant 1 : i32
    %11 = vector.broadcast %c1_i32_4 : i32 to vector<8x1xi32>
    %12 = arith.cmpi slt, %10, %11 : vector<8x1xi32>
    %cst = arith.constant 0.000000e+00 : f32
    %13 = vector.shape_cast %12 : vector<8x1xi1> to vector<8x1xi1>
    %14 = vector.broadcast %13 : vector<8x1xi1> to vector<8x512xi1>
    %15 = vector.broadcast %cst : f32 to vector<8x512xf32>
    %16 = arith.select %14, %3, %15 : vector<8x512xi1>, vector<8x512xf32>
    %cst_5 = arith.constant 0.000000e+00 : f32
    %17 = vector.shape_cast %12 : vector<8x1xi1> to vector<8x1xi1>
    %18 = vector.broadcast %17 : vector<8x1xi1> to vector<8x512xi1>
    %19 = vector.broadcast %cst_5 : f32 to vector<8x512xf32>
    %20 = arith.select %18, %4, %19 : vector<8x512xi1>, vector<8x512xf32>
    %21 = tpu.iota {dimensions = array<i32: 0>} : vector<512x16xi32>
    %22 = tpu.iota {dimensions = array<i32: 1>} : vector<512x16xi32>
    %c32_i32 = arith.constant 32 : i32
    %23 = vector.broadcast %c32_i32 : i32 to vector<512x16xi32>
    %24 = arith.muli %22, %23 : vector<512x16xi32>
    %25 = arith.cmpi sge, %21, %24 : vector<512x16xi32>
    %c1_i32_6 = arith.constant 1 : i32
    %26 = vector.broadcast %c1_i32_6 : i32 to vector<512x16xi32>
    %27 = arith.addi %22, %26 : vector<512x16xi32>
    %c32_i32_7 = arith.constant 32 : i32
    %28 = vector.broadcast %c32_i32_7 : i32 to vector<512x16xi32>
    %29 = arith.muli %27, %28 : vector<512x16xi32>
    %30 = arith.cmpi slt, %21, %29 : vector<512x16xi32>
    %31 = arith.andi %25, %30 : vector<512x16xi1>
    %32 = arith.extui %31 : vector<512x16xi1> to vector<512x16xi32>
    %33 = arith.sitofp %32 : vector<512x16xi32> to vector<512x16xf32>
    %34 = arith.mulf %16, %20 : vector<8x512xf32>
    %cst_8 = arith.constant dense<0.000000e+00> : vector<8x16xf32>
    %35 = tpu.matmul %34, %33, %cst_8 {dimension_numbers = #tpu.dot_dimension_numbers<[1], [0], [0], [1], [0, 0, 1, 1], [], []>} : vector<8x512xf32>, vector<512x16xf32>, vector<8x16xf32> -> vector<8x16xf32>
    %36 = arith.mulf %16, %16 : vector<8x512xf32>
    %cst_9 = arith.constant dense<0.000000e+00> : vector<8x16xf32>
    %37 = tpu.matmul %36, %33, %cst_9 {dimension_numbers = #tpu.dot_dimension_numbers<[1], [0], [0], [1], [0, 0, 1, 1], [], []>} : vector<8x512xf32>, vector<512x16xf32>, vector<8x16xf32> -> vector<8x16xf32>
    %38 = arith.mulf %20, %20 : vector<8x512xf32>
    %cst_10 = arith.constant dense<0.000000e+00> : vector<8x16xf32>
    %39 = tpu.matmul %38, %33, %cst_10 {dimension_numbers = #tpu.dot_dimension_numbers<[1], [0], [0], [1], [0, 0, 1, 1], [], []>} : vector<8x512xf32>, vector<512x16xf32>, vector<8x16xf32> -> vector<8x16xf32>
    %cst_11 = arith.constant 1.000000e-16 : f32
    %40 = vector.broadcast %cst_11 : f32 to vector<8x16xf32>
    %41 = arith.maximumf %37, %40 : vector<8x16xf32>
    %42 = math.rsqrt %41 : vector<8x16xf32>
    %43 = arith.mulf %35, %42 : vector<8x16xf32>
    %cst_12 = arith.constant 1.000000e-16 : f32
    %44 = vector.broadcast %cst_12 : f32 to vector<8x16xf32>
    %45 = arith.maximumf %39, %44 : vector<8x16xf32>
    %46 = math.rsqrt %45 : vector<8x16xf32>
    %47 = arith.mulf %43, %46 : vector<8x16xf32>
    %c0_13 = arith.constant 0 : index
    %c0_14 = arith.constant 0 : index
    %48 = vector.load %arg5[%c0_13, %c0_14] : memref<8x16xf32, #tpu.memory_space<vmem>>, vector<8x16xf32>
    %49 = arith.addf %48, %47 : vector<8x16xf32>
    %c0_15 = arith.constant 0 : index
    %c0_16 = arith.constant 0 : index
    %50 = vector.load %arg5[%c0_15, %c0_16] : memref<8x16xf32, #tpu.memory_space<vmem>>, vector<8x16xf32>
    tpu.vector_store %arg5[%c0_15, %c0_16], %49 {strides = array<i32>} : memref<8x16xf32, #tpu.memory_space<vmem>>, vector<8x16xf32>,
    %c0_i32_17 = arith.constant 0 : i32
    %51 = arith.cmpi eq, %arg1, %c0_i32_17 : i32
    %52 = arith.extui %51 : i1 to i32
    %c0_i32_18 = arith.constant 0 : i32
    %53 = arith.cmpi ne, %52, %c0_i32_18 : i32
    scf.if %53 {
      %c0_19 = arith.constant 0 : index
      %c0_20 = arith.constant 0 : index
      %54 = vector.load %arg5[%c0_19, %c0_20] : memref<8x16xf32, #tpu.memory_space<vmem>>, vector<8x16xf32>
      %55 = vector.shape_cast %54 : vector<8x16xf32> to vector<1x8x16xf32>
      %cst_21 = arith.constant dense<0.000000e+00> : vector<1xf32>
      %56 = vector.multi_reduction <add>, %55, %cst_21 [1, 2] : vector<1x8x16xf32> to vector<1xf32>
      %57 = vector.shape_cast %56 : vector<1xf32> to vector<1x1x1xf32>
      %58 = vector.extract %57[0, 0, 0] : f32 from vector<1x1x1xf32>
      %59 = vector.broadcast %58 : f32 to vector<1x1x1xf32>
      %c0_22 = arith.constant 0 : index
      %c0_23 = arith.constant 0 : index
      %c0_24 = arith.constant 0 : index
      %60 = vector.load %arg4[%c0_22, %c0_23, %c0_24] : memref<1x1x1xf32, #tpu.memory_space<vmem>>, vector<1x1x1xf32>
      tpu.vector_store %arg4[%c0_22, %c0_23, %c0_24], %59 {strides = array<i32>} : memref<1x1x1xf32, #tpu.memory_space<vmem>>, vector<1x1x1xf32>,
    } else {
    }
    return
  }
  func.func @transform_0(%arg0: i32, %arg1: i32) -> (i32, i32) {
    %c1_i32 = arith.constant 1 : i32
    %0 = arith.muli %arg0, %c1_i32 : i32
    %1 = arith.addi %0, %arg1 : i32
    %c0_i32 = arith.constant 0 : i32
    %2 = arith.minsi %1, %c0_i32 : i32
    %c0_i32_0 = arith.constant 0 : i32
    %c0_i32_1 = arith.constant 0 : i32
    return %2, %c0_i32_0 : i32, i32
  }
  func.func @transform_1(%arg0: i32, %arg1: i32) -> (i32, i32) {
    %c1_i32 = arith.constant 1 : i32
    %0 = arith.muli %arg0, %c1_i32 : i32
    %1 = arith.addi %0, %arg1 : i32
    %c0_i32 = arith.constant 0 : i32
    %2 = arith.minsi %1, %c0_i32 : i32
    %c0_i32_0 = arith.constant 0 : i32
    %c0_i32_1 = arith.constant 0 : i32
    return %2, %c0_i32_0 : i32, i32
  }
  func.func @transform_2(%arg0: i32, %arg1: i32) -> (i32, i32, i32) {
    %c0_i32 = arith.constant 0 : i32
    %c0_i32_0 = arith.constant 0 : i32
    %c0_i32_1 = arith.constant 0 : i32
    return %arg0, %c0_i32, %c0_i32_0 : i32, i32, i32
  }
}

</mosaic_0001>

<bundles_post_ra>
// kernel: cosine_similarity_loss.1
= control target key start
LH: loop header
LB: loop body
LE: loop exit
PB: predicated region body
PF: predicated region fallthrough
CT: control target
= control target key end

     0   :  { %s1910_s9 = smov 0   ;;  %s1912_s10 = smov 0   ;;  %s3026_s0 = inlined_call_operand.vmem [shape: f32[8,512], index: 0, kind: input, shape index: {}]   ;;  %s3027_s1 = inlined_call_operand.vmem [shape: f32[8,512], index: 1, kind: input, shape index: {}]   ;;  %s3028_s2 = inlined_call_operand.vmem [shape: f32[2,1,1], index: 2, kind: output, shape index: {}]  }
   0x1   :  { %s1914_s11 = smov 0  }
   0x2 LB: > { %s24_s12 = sadd.s32 1, %s1887_s10  ;;  %p1163_p0 = scmp.ge.s32.totalorder %s1891_s11, 1  ;;  %s1891_s11 = sphi %s1914_s11, %s12_s11   ;;  %s1887_s10 = sphi %s1912_s10, %s3264_s10   ;;  %s1883_s9 = sphi %s1910_s9, %s3263_s9  }
   0x3   : > { %p26_p1 = scmp.ge.s32.totalorder %s24_s12, 2  ;;  %p158_p2 = scmp.lt.s32.totalorder %s1891_s11, 3 }
   0x5   : > { %s3266_s12 = smov (%p26_p1, %s24_s12), 0  ;;  %p159_p3 = pnand %p1163_p0, %p158_p2 }
   0x6   : > { %v230_v0 = vlaneseq (!%p159_p3)  ;;  %v3084_v11 = vmov (!%p159_p3), 0  ;;  %v1893_v13 = vmov (!%p159_p3), 1.0|1.0   ;;  %v3086_v15 = vmov (!%p159_p3), 0  ;;  %s1174_s13 = sshll.u32 (!%p159_p3), %s1883_s9, 3  ;;  %p190_p4 = scmp.lt.s32.totalorder (!%p159_p3), %s1883_s9, 0 }
   0x7   : > { %162 = sbr.rel (%p159_p3) target bundleno = 629 (0x275), region = 28  ;;  %v3088_v18 = vmov (!%p159_p3), 0  ;;  %v3090_v21 = vmov (!%p159_p3), 0  ;;  %v3092_v24 = vmov (!%p159_p3), 0  ;;  %v3094_v31 = vmov (!%p159_p3), 0  ;;  %p211_p5 = scmp.lt.s32.totalorder (!%p159_p3), %s1883_s9, 1 }
   0x8   : > { %v1930_v1 = vshrl.u32 (!%p159_p3), %v230_v0, 7  ;;  %v309_v2 = vand.u32 (!%p159_p3), 127, %v230_v0  ;;  %v2031_v34 = vstv (!%p159_p3), %s1174_s13  ;;  %v3096_v35 = vmov (!%p159_p3), 0 }
   0x9   : > { %v3098_v40 = vmov (!%p159_p3), 0  ;;  %v3100_v49 = vmov (!%p159_p3), 0  ;;  %v3104_v55 = vmov (!%p159_p3), 0  ;;  %v3109_v0 = vmov (!%p159_p3), 0 }
   0xa   : > { %v260_v3 = vadd.s32 (!%p159_p3), 128, %v1930_v1  ;;  %v261_v4 = vadd.s32 (!%p159_p3), 136, %v1930_v1  ;;  %v1934_v5 = vmul.u32 (!%p159_p3), 32, %v309_v2  ;;  %v375_v6 = vadd.s32 (!%p159_p3), 1, %v309_v2 }
   0xb   : > { %v292_v7 = vadd.s32 (!%p159_p3), 384, %v1930_v1  ;;  %v293_v9 = vadd.s32 (!%p159_p3), 392, %v1930_v1  ;;  %v245_v10 = vadd.s32 (!%p159_p3), 8, %v1930_v1  ;;  %v276_v12 = vadd.s32 (!%p159_p3), 256, %v1930_v1 }
   0xc   : > { %vm327_vm0 = vcmp.ge.s32.totalorder (!%p159_p3), %v260_v3, %v1934_v5  ;;  %v1938_v8 = vmul.u32 (!%p159_p3), 32, %v375_v6  ;;  %vm328_vm1 = vcmp.ge.s32.totalorder (!%p159_p3), %v261_v4, %v1934_v5  ;;  %vm311_vm12 = vcmp.ge.s32.totalorder (!%p159_p3), %v1930_v1, %v1934_v5 }
   0xd   : > { %vm359_vm5 = vcmp.ge.s32.totalorder (!%p159_p3), %v292_v7, %v1934_v5  ;;  %vm360_vm8 = vcmp.ge.s32.totalorder (!%p159_p3), %v293_v9, %v1934_v5  ;;  %v277_v14 = vadd.s32 (!%p159_p3), 264, %v1930_v1  ;;  %vm312_vm15 = vcmp.ge.s32.totalorder (!%p159_p3), %v245_v10, %v1934_v5 }
   0xe   : > { %vm393_vm2 = vcmp.lt.s32.totalorder %v260_v3, %v1938_v8  ;;  %vm394_vm3 = vcmp.lt.s32.totalorder %v261_v4, %v1938_v8  ;;  %vm425_vm6 = vcmp.lt.s32.totalorder %v292_v7, %v1938_v8  ;;  %vm426_vm9 = vcmp.lt.s32.totalorder %v293_v9, %v1938_v8  ;;  %s191_s14 = scalar_select %p190_p4, %s1883_s9, 0 }
   0xf   : > { %vm457_vm4 = vmand %vm327_vm0, %vm393_vm2  ;;  %vm377_vm13 = vcmp.lt.s32.totalorder %v1930_v1, %v1938_v8  ;;  %vm378_vm0 = vcmp.lt.s32.totalorder %v245_v10, %v1938_v8  ;;  %v262_v16 = vadd.s32 144, %v1930_v1  ;;  %v263_v17 = vadd.s32 152, %v1930_v1  ;;  %s3270_s9 = smov (!%p211_p5, %s1883_s9), 1 }
  0x10   : > { %vm458_vm7 = vmand %vm328_vm1, %vm394_vm3  ;;  %vm343_vm3 = vcmp.ge.s32.totalorder %v276_v12, %v1934_v5  ;;  %v294_v19 = vadd.s32 400, %v1930_v1  ;;  %v295_v20 = vadd.s32 408, %v1930_v1  ;;  %v246_v22 = vadd.s32 16, %v1930_v1  ;;  %s3268_s14 = smov (!%p190_p4, %s191_s14), 0  ;;  %s213_s24 = scalar_lea.vmem %s3028_s2, %s3270_s9 }
  0x11   : > { %vm1949_vm10 = vmpackc.low %vm458_vm7, %vm457_vm4  ;;  %vm409_vm4 = vcmp.lt.s32.totalorder %v276_v12, %v1938_v8  ;;  %vm410_vm7 = vcmp.lt.s32.totalorder %v277_v14, %v1938_v8  ;;  %v247_v23 = vadd.s32 24, %v1930_v1  ;;  %v278_v25 = vadd.s32 272, %v1930_v1  ;;  %s1433_s15 = sshll.u32 %s3268_s14, 5 }
  0x12   : > { %v3085_v11 = vsel %vm1949_vm10, 4294967295, %v3084_v11  ;;  %1646 = vmatprep.subr.msk.bf16.mxu0 %vm1949_vm10, %v1893_v13  ;;  %vm489_vm11 = vmand %vm359_vm5, %vm425_vm6  ;;  %vm344_vm6 = vcmp.ge.s32.totalorder %v277_v14, %v1934_v5  ;;  %v279_v26 = vadd.s32 280, %v1930_v1  ;;  %v264_v27 = vadd.s32 160, %v1930_v1  ;;  %s2378_s18 = scalar_lea.vmem %s3026_s0, %s1433_s15  ;;  %s2383_s21 = scalar_lea.vmem %s3027_s1, %s1433_s15 }
  0x13   : > { %vm490_vm14 = vmand %vm360_vm8, %vm426_vm9  ;;  %v265_v28 = vadd.s32 168, %v1930_v1  ;;  %v296_v29 = vadd.s32 416, %v1930_v1  ;;  %v297_v30 = vadd.s32 424, %v1930_v1  ;;  %v2026_v32 = vadd.s32 32, %v1930_v1 }
  0x14   : > { %vm1964_vm1 = vmpackc.low %vm490_vm14, %vm489_vm11  ;;  %vm329_vm11 = vcmp.ge.s32.totalorder %v262_v16, %v1934_v5  ;;  %vm330_vm14 = vcmp.ge.s32.totalorder %v263_v17, %v1934_v5  ;;  %v2029_v33 = vadd.s32 40, %v1930_v1  ;;  %v2051_v36 = vadd.s32 288, %v1930_v1 }
  0x15   : > { %v3087_v15 = vsel %vm1964_vm1, 4294967295, %v3086_v15  ;;  %1678 = vmatprep.subr.msk.bf16.mxu1 %vm1964_vm1, %v1893_v13  ;;  %vm441_vm2 = vmand %vm311_vm12, %vm377_vm13  ;;  %vm395_vm12 = vcmp.lt.s32.totalorder %v262_v16, %v1938_v8  ;;  %vm398_vm1 = vcmp.lt.s32.totalorder %v265_v28, %v1938_v8  ;;  %v2054_v37 = vadd.s32 296, %v1930_v1 }
  0x16   : > { %vm442_vm5 = vmand %vm312_vm15, %vm378_vm0  ;;  %vm396_vm15 = vcmp.lt.s32.totalorder %v263_v17, %v1938_v8  ;;  %v2066_v38 = vadd.s32 176, %v1930_v1  ;;  %v2079_v39 = vadd.s32 184, %v1930_v1  ;;  %v2086_v41 = vadd.s32 432, %v1930_v1 }
  0x17   : > { %vm1977_vm8 = vmpackc.low %vm442_vm5, %vm441_vm2  ;;  %v2089_v42 = vadd.s32 440, %v1930_v1  ;;  %v2092_v43 = vadd.s32 48, %v1930_v1  ;;  %v2095_v44 = vadd.s32 56, %v1930_v1  ;;  %v2120_v45 = vadd.s32 464, %v1930_v1 }
  0x18   : > { %v3089_v18 = vsel %vm1977_vm8, 4294967295, %v3088_v18  ;;  %1648 = vmatpush3.bf16.msk.msra.mxu0 %vm1977_vm8, %v1893_v13  ;;  %vm473_vm9 = vmand %vm343_vm3, %vm409_vm4  ;;  %vm361_vm3 = vcmp.ge.s32.totalorder %v294_v19, %v1934_v5  ;;  %vm427_vm4 = vcmp.lt.s32.totalorder %v294_v19, %v1938_v8  ;;  %vm397_vm8 = vcmp.lt.s32.totalorder %v264_v27, %v1938_v8 }
  0x19   : > { %vm474_vm13 = vmand %vm344_vm6, %vm410_vm7  ;;  %vm362_vm6 = vcmp.ge.s32.totalorder %v295_v20, %v1934_v5  ;;  %vm428_vm7 = vcmp.lt.s32.totalorder %v295_v20, %v1938_v8  ;;  %v2123_v46 = vadd.s32 472, %v1930_v1  ;;  %v2126_v47 = vadd.s32 80, %v1930_v1 }
  0x1a   : > { %vm1990_vm0 = vmpackc.low %vm474_vm13, %vm473_vm9  ;;  %vm379_vm13 = vcmp.lt.s32.totalorder %v246_v22, %v1938_v8  ;;  %v2129_v48 = vadd.s32 88, %v1930_v1  ;;  %v2142_v50 = vadd.s32 304, %v1930_v1  ;;  %v2152_v51 = vadd.s32 312, %v1930_v1 }
  0x1b   : > { %v3091_v21 = vsel %vm1990_vm0, 4294967295, %v3090_v21  ;;  %1680 = vmatpush3.bf16.msk.msra.mxu1 %vm1990_vm0, %v1893_v13  ;;  %vm459_vm2 = vmand %vm329_vm11, %vm395_vm12  ;;  %vm313_vm12 = vcmp.ge.s32.totalorder %v246_v22, %v1934_v5  ;;  %vm331_vm0 = vcmp.ge.s32.totalorder %v264_v27, %v1934_v5  ;;  %v2155_v52 = vadd.s32 192, %v1930_v1  ;;  %v221_v22 = vld [vmem:[%s2378_s18 + $0x8] sm:$0xff]  ;;  %v223_v27 = vld [vmem:[%s2378_s18 + $0x18] sm:$0xff] }
  0x1c   : > { %vm460_vm5 = vmand %vm330_vm14, %vm396_vm15  ;;  %vm314_vm15 = vcmp.ge.s32.totalorder %v247_v23, %v1934_v5  ;;  %v2158_v53 = vadd.s32 200, %v1930_v1  ;;  %v2161_v54 = vadd.s32 448, %v1930_v1  ;;  %v2208_v56 = vadd.s32 336, %v1930_v1 }
  0x1d   : > { %vm2003_vm9 = vmpackc.low %vm460_vm5, %vm459_vm2  ;;  %vm380_vm2 = vcmp.lt.s32.totalorder %v247_v23, %v1938_v8  ;;  %v2211_v57 = vadd.s32 344, %v1930_v1  ;;  %v2214_v58 = vadd.s32 224, %v1930_v1  ;;  %v2217_v59 = vadd.s32 232, %v1930_v1  ;;  %v225_v23 = vld [vmem:[%s2383_s21 + $0x8] sm:$0xff] }
  0x1e   : > { %v3093_v24 = vsel %vm2003_vm9, 4294967295, %v3092_v24  ;;  %1650 = vmatprep.subr.msk.bf16.mxu0 %vm2003_vm9, %v1893_v13  ;;  %vm491_vm11 = vmand %vm361_vm3, %vm427_vm4  ;;  %vm345_vm4 = vcmp.ge.s32.totalorder %v278_v25, %v1934_v5  ;;  %vm332_vm9 = vcmp.ge.s32.totalorder %v265_v28, %v1934_v5  ;;  %v2230_v60 = vadd.s32 480, %v1930_v1  ;;  %v227_v28 = vld [vmem:[%s2383_s21 + $0x18] sm:$0xff] }
  0x1f   : > { %vm492_vm14 = vmand %vm362_vm6, %vm428_vm7  ;;  %vm346_vm6 = vcmp.ge.s32.totalorder %v279_v26, %v1934_v5  ;;  %vm411_vm7 = vcmp.lt.s32.totalorder %v278_v25, %v1938_v8  ;;  %v2233_v61 = vadd.s32 488, %v1930_v1  ;;  %v2236_v62 = vadd.s32 96, %v1930_v1 }
  0x20   : > { %vm2021_vm5 = vmpackc.low %vm492_vm14, %vm491_vm11  ;;  %vm412_vm11 = vcmp.lt.s32.totalorder %v279_v26, %v1938_v8  ;;  %v2239_v63 = vadd.s32 104, %v1930_v1  ;;  %v3114_v2 = vmov 0  ;;  %v2316_v3 = vadd.s32 352, %v1930_v1 }
  0x21   : > { %v3095_v31 = vsel %vm2021_vm5, 4294967295, %v3094_v31  ;;  %1682 = vmatprep.subr.msk.bf16.mxu1 %vm2021_vm5, %v1893_v13  ;;  %vm443_vm3 = vmand %vm313_vm12, %vm379_vm13  ;;  %vm3107_vm12 = vcmp.lt.s32.totalorder %v2029_v33, %v1938_v8  ;;  %v2319_v4 = vadd.s32 360, %v1930_v1  ;;  %v2322_v6 = vadd.s32 240, %v1930_v1 }
  0x22   : > { %vm444_vm14 = vmand %vm314_vm15, %vm380_vm2  ;;  %vm429_vm2 = vcmp.lt.s32.totalorder %v296_v29, %v1938_v8  ;;  %v2325_v7 = vadd.s32 248, %v1930_v1  ;;  %v2335_v9 = vadd.s32 496, %v1930_v1  ;;  %v2338_v10 = vadd.s32 504, %v1930_v1 }
  0x23   : > { %vm2044_vm10 = vmpackc.low %vm444_vm14, %vm443_vm3  ;;  %vm430_vm3 = vcmp.lt.s32.totalorder %v297_v30, %v1938_v8  ;;  %v2341_v12 = vadd.s32 112, %v1930_v1  ;;  %v2344_v14 = vadd.s32 120, %v1930_v1  ;;  %v3120_v16 = vmov 0 }
  0x24   : > { %v3097_v35 = vsel %vm2044_vm10, 4294967295, %v3096_v35  ;;  %1652 = vmatpush3.bf16.msk.msra.mxu0 %vm2044_vm10, %v1893_v13  ;;  %vm475_vm15 = vmand %vm345_vm4, %vm411_vm7  ;;  %vm381_vm4 = vcmp.lt.s32.totalorder %v2026_v32, %v1938_v8  ;;  %v3126_v17 = vmov 0  ;;  %v2423_v19 = vadd.s32 368, %v1930_v1 }
  0x25   : > { %vm476_vm13 = vmand %vm346_vm6, %vm412_vm11  ;;  %v2426_v20 = vadd.s32 376, %v1930_v1  ;;  %v2432_v25 = vadd.s32 %v2031_v34, %v1930_v1  ;;  %v301_v26 = vadd.s32 456, %v1930_v1 }
  0x26   : > { %vm2081_vm14 = vmpackc.low %vm476_vm13, %vm475_vm15  ;;  %vm413_vm15 = vcmp.lt.s32.totalorder %v2051_v36, %v1938_v8 }
  0x27   : > { %v3099_v40 = vsel %vm2081_vm14, 4294967295, %v3098_v40  ;;  %1684 = vmatpush3.bf16.msk.msra.mxu1 %vm2081_vm14, %v1893_v13  ;;  %vm461_vm6 = vmand %vm331_vm0, %vm397_vm8 }
  0x28   : > { %vm462_vm7 = vmand %vm332_vm9, %vm398_vm1  ;;  %vm3103_vm1 = vcmp.ge.s32.totalorder %v297_v30, %v1934_v5 }
  0x29   : > { %vm2131_vm0 = vmpackc.low %vm462_vm7, %vm461_vm6  ;;  %vm3102_vm7 = vcmp.ge.s32.totalorder %v296_v29, %v1934_v5  ;;  %v3132_v29 = vmov 0 }
  0x2a   : > { %v3101_v49 = vsel %vm2131_vm0, 4294967295, %v3100_v49  ;;  %1654 = vmatprep.subr.msk.bf16.mxu0 %vm2131_vm0, %v1893_v13  ;;  %vm493_vm6 = vmand %vm3102_vm7, %vm429_vm2  ;;  %vm3113_vm2 = vcmp.ge.s32.totalorder %v2054_v37, %v1934_v5 }
  0x2b   : > { %vm494_vm8 = vmand %vm3103_vm1, %vm430_vm3 }
  0x2c   : > { %vm2182_vm3 = vmpackc.low %vm494_vm8, %vm493_vm6  ;;  %vm3106_vm6 = vcmp.ge.s32.totalorder %v2026_v32, %v1934_v5  ;;  %vm3108_vm8 = vcmp.ge.s32.totalorder %v2029_v33, %v1934_v5 }
  0x2d   : > { %v3105_v55 = vsel %vm2182_vm3, 4294967295, %v3104_v55  ;;  %1686 = vmatprep.subr.msk.bf16.mxu1 %vm2182_vm3, %v1893_v13  ;;  %vm445_vm13 = vmand %vm3106_vm6, %vm381_vm4  ;;  %vm402_vm6 = vcmp.lt.s32.totalorder %v2158_v53, %v1938_v8 }
  0x2e   : > { %vm446_vm4 = vmand %vm3108_vm8, %vm3107_vm12  ;;  %vm3112_vm8 = vcmp.lt.s32.totalorder %v2054_v37, %v1938_v8  ;;  %vm3130_vm12 = vcmp.lt.s32.totalorder %v2095_v44, %v1938_v8  ;;  %v252_v37 = vadd.s32 64, %v1930_v1 }
  0x2f   : > { %vm2241_vm1 = vmpackc.low %vm446_vm4, %vm445_vm13  ;;  %vm3111_vm4 = vcmp.ge.s32.totalorder %v2051_v36, %v1934_v5  ;;  %vm3119_vm13 = vcmp.ge.s32.totalorder %v2079_v39, %v1934_v5  ;;  %v3138_v36 = vmov 0 }
  0x30   : > { %v3110_v0 = vsel %vm2241_vm1, 4294967295, %v3109_v0  ;;  %1656 = vmatpush3.bf16.msk.msra.mxu0 %vm2241_vm1, %v1893_v13  ;;  %vm477_vm11 = vmand %vm3111_vm4, %vm413_vm15  ;;  %vm3047_vm15 = vcmp.lt.s32.totalorder %v2432_v25, 1  ;;  %vm319_vm1 = vcmp.ge.s32.totalorder %v252_v37, %v1934_v5 }
  0x31   : > { %vm478_vm7 = vmand %vm3113_vm2, %vm3112_vm8  ;;  %vm3118_vm8 = vcmp.lt.s32.totalorder %v2079_v39, %v1938_v8  ;;  %v2485_v30 = vsel %vm3047_vm15, %v221_v22, 0.0  ;;  %v2489_v32 = vsel %vm3047_vm15, %v225_v23, 0.0  ;;  %v2493_v33 = vsel %vm3047_vm15, %v223_v27, 0.0 }
  0x32   : > { %vm2294_vm9 = vmpackc.low %vm478_vm7, %vm477_vm11  ;;  %vm3116_vm11 = vcmp.lt.s32.totalorder %v2066_v38, %v1938_v8  ;;  %vm3117_vm7 = vcmp.ge.s32.totalorder %v2066_v38, %v1934_v5  ;;  %v2497_v34 = vsel %vm3047_vm15, %v227_v28, 0.0  ;;  %v634_v38 = vmul.f32 %v2489_v32, %v2485_v30 }
  0x33   : > { %v3115_v2 = vsel %vm2294_vm9, 4294967295, %v3114_v2  ;;  %1688 = vmatpush3.bf16.msk.msra.mxu1 %vm2294_vm9, %v1893_v13  ;;  %vm463_vm2 = vmand %vm3117_vm7, %vm3116_vm11  ;;  %v636_v39 = vmul.f32 %v2497_v34, %v2493_v33  ;;  %vm368_vm15 = vcmp.ge.s32.totalorder %v301_v26, %v1934_v5  ;;  %v3155_v22 = vmov 0 }
  0x34   : > { %vm464_vm11 = vmand %vm3119_vm13, %vm3118_vm8  ;;  %vm401_vm13 = vcmp.lt.s32.totalorder %v2155_v52, %v1938_v8  ;;  %701 = vmatprep.mubr.f32.mxu0 %v634_v38 }
  0x35   : > { %vm2346_vm7 = vmpackc.low %vm464_vm11, %vm463_vm2  ;;  %vm3122_vm2 = vcmp.lt.s32.totalorder %v2086_v41, %v1938_v8  ;;  %vm3123_vm11 = vcmp.ge.s32.totalorder %v2086_v41, %v1934_v5  ;;  %v253_v41 = vadd.s32 72, %v1930_v1  ;;  %771 = vmatprep.mubr.f32.mxu1 %v636_v39 }
  0x36   : > { %v3121_v16 = vsel %vm2346_vm7, 4294967295, %v3120_v16  ;;  %1658 = vmatprep.subr.msk.bf16.mxu0 %vm2346_vm7, %v1893_v13  ;;  %vm495_vm4 = vmand %vm3123_vm11, %vm3122_vm2  ;;  %vm3124_vm2 = vcmp.lt.s32.totalorder %v2089_v42, %v1938_v8  ;;  %vm3125_vm11 = vcmp.ge.s32.totalorder %v2089_v42, %v1934_v5  ;;  %v3141_v42 = vmov 0 }
  0x37   : > { %vm496_vm8 = vmand %vm3125_vm11, %vm3124_vm2  ;;  %vm320_vm3 = vcmp.ge.s32.totalorder %v253_v41, %v1934_v5 }
  0x38   : > { %vm2399_vm9 = vmpackc.low %vm496_vm8, %vm495_vm4  ;;  %vm3128_vm4 = vcmp.lt.s32.totalorder %v2092_v43, %v1938_v8  ;;  %vm3129_vm8 = vcmp.ge.s32.totalorder %v2092_v43, %v1934_v5  ;;  %v284_v43 = vadd.s32 320, %v1930_v1 }
  0x39   : > { %v3127_v17 = vsel %vm2399_vm9, 4294967295, %v3126_v17  ;;  %1690 = vmatprep.subr.msk.bf16.mxu1 %vm2399_vm9, %v1893_v13  ;;  %vm447_vm2 = vmand %vm3129_vm8, %vm3128_vm4  ;;  %vm3131_vm4 = vcmp.ge.s32.totalorder %v2095_v44, %v1934_v5  ;;  %vm3137_vm9 = vcmp.ge.s32.totalorder %v2152_v51, %v1934_v5  ;;  %v285_v44 = vadd.s32 328, %v1930_v1 }
  0x3a   : > { %vm448_vm8 = vmand %vm3131_vm4, %vm3130_vm12  ;;  %vm336_vm4 = vcmp.ge.s32.totalorder %v2158_v53, %v1934_v5  ;;  %v3145_v53 = vmov 0 }
  0x3b   : > { %vm2449_vm11 = vmpackc.low %vm448_vm8, %vm447_vm2  ;;  %vm3134_vm2 = vcmp.lt.s32.totalorder %v2142_v50, %v1938_v8  ;;  %vm3135_vm8 = vcmp.ge.s32.totalorder %v2142_v50, %v1934_v5  ;;  %v3143_v50 = vmov 0 }
  0x3c   : > { %v3133_v29 = vsel %vm2449_vm11, 4294967295, %v3132_v29  ;;  %1660 = vmatpush3.bf16.msk.msra.mxu0 %vm2449_vm11, %v1893_v13  ;;  %vm479_vm12 = vmand %vm3135_vm8, %vm3134_vm2  ;;  %vm3136_vm11 = vcmp.lt.s32.totalorder %v2152_v51, %v1938_v8  ;;  %v270_v51 = vadd.s32 208, %v1930_v1 }
  0x3d   : > { %vm480_vm7 = vmand %vm3137_vm9, %vm3136_vm11  ;;  %vm3140_vm9 = vcmp.ge.s32.totalorder %v2155_v52, %v1934_v5  ;;  %v271_v52 = vadd.s32 216, %v1930_v1  ;;  %v3147_v1 = vmov 0 }
  0x3e   : > { %vm2499_vm2 = vmpackc.low %vm480_vm7, %vm479_vm12  ;;  %vm367_vm7 = vcmp.ge.s32.totalorder %v2161_v54, %v1934_v5  ;;  %vm433_vm12 = vcmp.lt.s32.totalorder %v2161_v54, %v1938_v8  ;;  %v3149_v54 = vmov 0 }
  0x3f   : > { %v3139_v36 = vsel %vm2499_vm2, 4294967295, %v3138_v36  ;;  %1692 = vmatpush3.bf16.msk.msra.mxu1 %vm2499_vm2, %v1893_v13  ;;  %vm465_vm11 = vmand %vm3140_vm9, %vm401_vm13  ;;  %vm434_vm2 = vcmp.lt.s32.totalorder %v301_v26, %v1938_v8 }
  0x40   : > { %vm466_vm8 = vmand %vm336_vm4, %vm402_vm6  ;;  %vm385_vm6 = vcmp.lt.s32.totalorder %v252_v37, %v1938_v8 }
  0x41   : > { %vm2527_vm13 = vmpackc.low %vm466_vm8, %vm465_vm11  ;;  %vm386_vm11 = vcmp.lt.s32.totalorder %v253_v41, %v1938_v8 }
  0x42   : > { %v3142_v42 = vsel %vm2527_vm13, 4294967295, %v3141_v42  ;;  %1662 = vmatprep.subr.msk.bf16.mxu0 %vm2527_vm13, %v1893_v13  ;;  %vm497_vm9 = vmand %vm367_vm7, %vm433_vm12  ;;  %vm351_vm12 = vcmp.ge.s32.totalorder %v284_v43, %v1934_v5  ;;  %vm417_vm13 = vcmp.lt.s32.totalorder %v284_v43, %v1938_v8 }
  0x43   : > { %vm498_vm4 = vmand %vm368_vm15, %vm434_vm2  ;;  %vm352_vm2 = vcmp.ge.s32.totalorder %v285_v44, %v1934_v5 }
  0x44   : > { %vm2540_vm8 = vmpackc.low %vm498_vm4, %vm497_vm9  ;;  %vm418_vm9 = vcmp.lt.s32.totalorder %v285_v44, %v1938_v8 }
  0x45   : > { %v3144_v50 = vsel %vm2540_vm8, 4294967295, %v3143_v50  ;;  %1694 = vmatprep.subr.msk.bf16.mxu1 %vm2540_vm8, %v1893_v13  ;;  %vm449_vm7 = vmand %vm319_vm1, %vm385_vm6  ;;  %vm337_vm6 = vcmp.ge.s32.totalorder %v270_v51, %v1934_v5  ;;  %vm403_vm8 = vcmp.lt.s32.totalorder %v270_v51, %v1938_v8 }
  0x46   : > { %vm450_vm15 = vmand %vm320_vm3, %vm386_vm11  ;;  %vm338_vm3 = vcmp.ge.s32.totalorder %v271_v52, %v1934_v5  ;;  %vm404_vm11 = vcmp.lt.s32.totalorder %v271_v52, %v1938_v8 }
  0x47   : > { %vm2553_vm4 = vmpackc.low %vm450_vm15, %vm449_vm7 }
  0x48   : > { %v3146_v53 = vsel %vm2553_vm4, 4294967295, %v3145_v53  ;;  %1664 = vmatpush3.bf16.msk.msra.mxu0 %vm2553_vm4, %v1893_v13  ;;  %vm481_vm1 = vmand %vm351_vm12, %vm417_vm13  ;;  %vm3152_vm12 = vcmp.ge.s32.totalorder %v2120_v45, %v1934_v5 }
  0x49   : > { %vm482_vm14 = vmand %vm352_vm2, %vm418_vm9  ;;  %vm3153_vm9 = vcmp.lt.s32.totalorder %v2123_v46, %v1938_v8 }
  0x4a   : > { %vm2564_vm0 = vmpackc.low %vm482_vm14, %vm481_vm1  ;;  %vm3151_vm14 = vcmp.lt.s32.totalorder %v2120_v45, %v1938_v8 }
  0x4b   : > { %v3148_v1 = vsel %vm2564_vm0, 4294967295, %v3147_v1  ;;  %1696 = vmatpush3.bf16.msk.msra.mxu1 %vm2564_vm0, %v1893_v13  ;;  %vm467_vm7 = vmand %vm337_vm6, %vm403_vm8  ;;  %vm3154_vm8 = vcmp.ge.s32.totalorder %v2123_v46, %v1934_v5  ;;  %v3167_v46 = vmov 0 }
  0x4c   : > { %vm468_vm15 = vmand %vm338_vm3, %vm404_vm11  ;;  %vm3157_vm3 = vcmp.lt.s32.totalorder %v2126_v47, %v1938_v8  ;;  %vm3158_vm11 = vcmp.ge.s32.totalorder %v2126_v47, %v1934_v5  ;;  %v3173_v47 = vmov 0 }
  0x4d   : > { %vm2571_vm13 = vmpackc.low %vm468_vm15, %vm467_vm7  ;;  %vm3159_vm15 = vcmp.lt.s32.totalorder %v2129_v48, %v1938_v8 }
  0x4e   : > { %v3150_v54 = vsel %vm2571_vm13, 4294967295, %v3149_v54  ;;  %1666 = vmatprep.subr.msk.bf16.mxu0 %vm2571_vm13, %v1893_v13  ;;  %vm499_vm2 = vmand %vm3152_vm12, %vm3151_vm14  ;;  %vm3160_vm14 = vcmp.ge.s32.totalorder %v2129_v48, %v1934_v5  ;;  %v3179_v48 = vmov 0 }
  0x4f   : > { %vm500_vm1 = vmand %vm3154_vm8, %vm3153_vm9  ;;  %vm3163_vm9 = vcmp.lt.s32.totalorder %v2208_v56, %v1938_v8  ;;  %vm3164_vm8 = vcmp.ge.s32.totalorder %v2208_v56, %v1934_v5  ;;  %v3185_v56 = vmov 0 }
  0x50   : > { %vm2590_vm6 = vmpackc.low %vm500_vm1, %vm499_vm2 }
  0x51   : > { %v3156_v22 = vsel %vm2590_vm6, 4294967295, %v3155_v22  ;;  %1698 = vmatprep.subr.msk.bf16.mxu1 %vm2590_vm6, %v1893_v13  ;;  %vm451_vm7 = vmand %vm3158_vm11, %vm3157_vm3  ;;  %vm3165_vm3 = vcmp.lt.s32.totalorder %v2211_v57, %v1938_v8  ;;  %vm3166_vm11 = vcmp.ge.s32.totalorder %v2211_v57, %v1934_v5  ;;  %v3191_v57 = vmov 0 }
  0x52   : > { %vm452_vm12 = vmand %vm3160_vm14, %vm3159_vm15  ;;  %vm3169_vm14 = vcmp.lt.s32.totalorder %v2214_v58, %v1938_v8 }
  0x53   : > { %vm2609_vm2 = vmpackc.low %vm452_vm12, %vm451_vm7  ;;  %vm3170_vm12 = vcmp.ge.s32.totalorder %v2214_v58, %v1934_v5  ;;  %v3197_v58 = vmov 0 }
  0x54   : > { %1668 = vmatpush3.bf16.msk.msra.mxu0 %vm2609_vm2, %v1893_v13  ;;  %vm483_vm1 = vmand %vm3164_vm8, %vm3163_vm9  ;;  %vm3171_vm8 = vcmp.lt.s32.totalorder %v2217_v59, %v1938_v8 }
  0x55   : > { %vm484_vm7 = vmand %vm3166_vm11, %vm3165_vm3 }
  0x56   : > { %vm2628_vm15 = vmpackc.low %vm484_vm7, %vm483_vm1  ;;  %vm3172_vm1 = vcmp.ge.s32.totalorder %v2217_v59, %v1934_v5  ;;  %vm3175_vm7 = vcmp.lt.s32.totalorder %v2230_v60, %v1938_v8  ;;  %v220_v59 = vld [vmem:[%s2378_s18] sm:$0xff] }
  0x57   : > { %v3168_v46 = vsel %vm2628_vm15, 4294967295, %v3167_v46  ;;  %1700 = vmatpush3.bf16.msk.msra.mxu1 %vm2628_vm15, %v1893_v13  ;;  %vm469_vm9 = vmand %vm3170_vm12, %vm3169_vm14  ;;  %vm3176_vm14 = vcmp.ge.s32.totalorder %v2230_v60, %v1934_v5  ;;  %vm3177_vm15 = vcmp.lt.s32.totalorder %v2233_v61, %v1938_v8  ;;  %v224_v60 = vld [vmem:[%s2383_s21] sm:$0xff] }
  0x58   : > { %vm470_vm3 = vmand %vm3172_vm1, %vm3171_vm8 }
  0x59   : > { %vm2647_vm11 = vmpackc.low %vm470_vm3, %vm469_vm9  ;;  %vm3178_vm9 = vcmp.ge.s32.totalorder %v2233_v61, %v1934_v5  ;;  %vm3181_vm3 = vcmp.lt.s32.totalorder %v2236_v62, %v1938_v8  ;;  %v3203_v61 = vmov 0 }
  0x5a   : > { %v3174_v47 = vsel %vm2647_vm11, 4294967295, %v3173_v47  ;;  %1670 = vmatprep.subr.msk.bf16.mxu0 %vm2647_vm11, %v1893_v13  ;;  %vm501_vm12 = vmand %vm3176_vm14, %vm3175_vm7  ;;  %vm3182_vm7 = vcmp.ge.s32.totalorder %v2236_v62, %v1934_v5  ;;  %vm3183_vm11 = vcmp.lt.s32.totalorder %v2239_v63, %v1938_v8 }
  0x5b   : > { %vm502_vm8 = vmand %vm3178_vm9, %vm3177_vm15  ;;  %vm3184_vm15 = vcmp.ge.s32.totalorder %v2239_v63, %v1934_v5 }
  0x5c   : > { %vm2666_vm1 = vmpackc.low %vm502_vm8, %vm501_vm12  ;;  %vm3187_vm8 = vcmp.lt.s32.totalorder %v2316_v3, %v1938_v8 }
  0x5d   : > { %v3180_v48 = vsel %vm2666_vm1, 4294967295, %v3179_v48  ;;  %1702 = vmatprep.subr.msk.bf16.mxu1 %vm2666_vm1, %v1893_v13  ;;  %vm453_vm14 = vmand %vm3182_vm7, %vm3181_vm3  ;;  %vm3188_vm3 = vcmp.ge.s32.totalorder %v2316_v3, %v1934_v5  ;;  %vm3189_vm1 = vcmp.lt.s32.totalorder %v2319_v4, %v1938_v8  ;;  %v222_v3 = vld [vmem:[%s2378_s18 + $0x10] sm:$0xff] }
  0x5e   : > { %vm454_vm12 = vmand %vm3184_vm15, %vm3183_vm11  ;;  %vm3190_vm11 = vcmp.ge.s32.totalorder %v2319_v4, %v1934_v5  ;;  %v226_v4 = vld [vmem:[%s2383_s21 + $0x10] sm:$0xff] }
  0x5f   : > { %vm2685_vm9 = vmpackc.low %vm454_vm12, %vm453_vm14  ;;  %vm3193_vm12 = vcmp.lt.s32.totalorder %v2322_v6, %v1938_v8 }
  0x60   : > { %v3186_v56 = vsel %vm2685_vm9, 4294967295, %v3185_v56  ;;  %1672 = vmatpush3.bf16.msk.msra.mxu0 %vm2685_vm9, %v1893_v13  ;;  %vm485_vm7 = vmand %vm3188_vm3, %vm3187_vm8  ;;  %vm3194_vm8 = vcmp.ge.s32.totalorder %v2322_v6, %v1934_v5  ;;  %vm3195_vm9 = vcmp.lt.s32.totalorder %v2325_v7, %v1938_v8  ;;  %v3211_v6 = vmov 0 }
  0x61   : > { %vm486_vm14 = vmand %vm3190_vm11, %vm3189_vm1  ;;  %vm3196_vm1 = vcmp.ge.s32.totalorder %v2325_v7, %v1934_v5 }
  0x62   : > { %vm2704_vm15 = vmpackc.low %vm486_vm14, %vm485_vm7  ;;  %vm3199_vm14 = vcmp.lt.s32.totalorder %v2335_v9, %v1938_v8 }
  0x63   : > { %v3192_v57 = vsel %vm2704_vm15, 4294967295, %v3191_v57  ;;  %1704 = vmatpush3.bf16.msk.msra.mxu1 %vm2704_vm15, %v1893_v13  ;;  %vm471_vm3 = vmand %vm3194_vm8, %vm3193_vm12  ;;  %vm3200_vm12 = vcmp.ge.s32.totalorder %v2335_v9, %v1934_v5  ;;  %vm3205_vm15 = vcmp.lt.s32.totalorder %v2432_v25, 1 }
  0x64   : > { %vm472_vm7 = vmand %vm3196_vm1, %vm3195_vm9  ;;  %vm3201_vm9 = vcmp.lt.s32.totalorder %v2338_v10, %v1938_v8  ;;  %v237_v62 = vsel %vm3205_vm15, %v220_v59, 0.0 }
  0x65   : > { %vm2723_vm11 = vmpackc.low %vm472_vm7, %vm471_vm3  ;;  %vm3202_vm3 = vcmp.ge.s32.totalorder %v2338_v10, %v1934_v5 }
  0x66   : > { %v3198_v58 = vsel %vm2723_vm11, 4294967295, %v3197_v58  ;;  %1674 = vmatprep.subr.msk.bf16.mxu0 %vm2723_vm11, %v1893_v13  ;;  %vm503_vm8 = vmand %vm3200_vm12, %vm3199_vm14  ;;  %vm3207_vm14 = vcmp.lt.s32.totalorder %v2341_v12, %v1938_v8  ;;  %vm3208_vm12 = vcmp.ge.s32.totalorder %v2341_v12, %v1934_v5  ;;  %v778_v12 = vmul.f32 %v2485_v30, %v2485_v30 }
  0x67   : > { %vm504_vm1 = vmand %vm3202_vm3, %vm3201_vm9 }
  0x68   : > { %vm2744_vm7 = vmpackc.low %vm504_vm1, %vm503_vm8  ;;  %vm3213_vm1 = vcmp.lt.s32.totalorder %v2432_v25, 1  ;;  %v924_v25 = vmul.f32 %v2497_v34, %v2497_v34 }
  0x69   : > { %v3204_v61 = vsel %vm2744_vm7, 4294967295, %v3203_v61  ;;  %vm3206_vm11 = vmmov %vm3205_vm15  ;;  %1706 = vmatprep.subr.msk.bf16.mxu1 %vm2744_vm7, %v1893_v13  ;;  %vm3209_vm15 = vcmp.lt.s32.totalorder %v2344_v14, %v1938_v8  ;;  %v239_v9 = vsel %vm3213_vm1, %v222_v3, 0.0 }
  0x6a   : > { %v2752_v63 = vsel %vm3206_vm11, %v224_v60, 0.0  ;;  %vm455_vm8 = vmand %vm3208_vm12, %vm3207_vm14  ;;  %vm3210_vm11 = vcmp.ge.s32.totalorder %v2344_v14, %v1934_v5  ;;  %vm3215_vm14 = vcmp.lt.s32.totalorder %v2423_v19, %v1938_v8  ;;  %vm3216_vm12 = vcmp.ge.s32.totalorder %v2423_v19, %v1934_v5 }
  0x6b   : > { %vm456_vm9 = vmand %vm3210_vm11, %vm3209_vm15  ;;  %v633_v7 = vmul.f32 %v2752_v63, %v237_v62  ;;  %vm3217_vm15 = vcmp.lt.s32.totalorder %v2426_v20, %v1938_v8  ;;  %vm3218_vm11 = vcmp.ge.s32.totalorder %v2426_v20, %v1934_v5  ;;  %v3220_v14 = vmov 0 }
  0x6c   : > { %vm2771_vm3 = vmpackc.low %vm456_vm9, %vm455_vm8  ;;  %v780_v5 = vmul.f32 %v2493_v33, %v2493_v33  ;;  %v777_v8 = vmul.f32 %v237_v62, %v237_v62  ;;  %v922_v20 = vmul.f32 %v2489_v32, %v2489_v32  ;;  %v779_v23 = vmul.f32 %v239_v9, %v239_v9 }
  0x6d   : > { %v3212_v6 = vsel %vm2771_vm3, 4294967295, %v3211_v6  ;;  %vm3214_vm7 = vmmov %vm3213_vm1  ;;  %1676 = vmatpush3.bf16.msk.msra.mxu0 %vm2771_vm3, %v1893_v13 }
  0x6e   : > { %v2780_v10 = vsel %vm3214_vm7, %v226_v4, 0.0  ;;  %vm487_vm8 = vmand %vm3216_vm12, %vm3215_vm14  ;;  %vm3219_vm7 = vnez %v3085_v11  ;;  %vm3222_vm14 = vnez %v3087_v15  ;;  %vm3223_vm12 = vnez %v3089_v18 }
  0x6f   : > { %vm488_vm9 = vmand %vm3218_vm11, %vm3217_vm15  ;;  %1710 = vmatprep.subr.msk.bf16.mxu0 %vm3219_vm7, %v1893_v13  ;;  %v635_v19 = vmul.f32 %v2780_v10, %v239_v9  ;;  %vm3225_vm15 = vnez %v3091_v21  ;;  %vm3226_vm11 = vnez %v3101_v49  ;;  %v921_v11 = vmul.f32 %v2752_v63, %v2752_v63 }
  0x70   : > { %vm2802_vm1 = vmpackc.low %vm488_vm9, %vm487_vm8  ;;  %702 = vmatmul.mubr.f32.vlgmr.msra.gmra.mrb[0].mxu0 %v633_v7  ;;  %vm3224_vm8 = vnez %v3093_v24  ;;  %vm3227_vm9 = vnez %v3099_v40  ;;  %v923_v15 = vmul.f32 %v2780_v10, %v2780_v10  ;;  %v1894_v18 = vmov 0.0  }
  0x71   : > { %v3221_v14 = vsel %vm2802_vm1, 4294967295, %v3220_v14  ;;  %1708 = vmatpush3.bf16.msk.msra.mxu1 %vm2802_vm1, %v1893_v13  ;;  %1712 = vmatpush3.bf16.msk.msra.mxu0 %vm3223_vm12, %v1893_v13 }
  0x72   : > { %1742 = vmatprep.subr.msk.bf16.mxu1 %vm3222_vm14, %v1893_v13  ;;  %1714 = vmatprep.subr.msk.bf16.mxu0 %vm3224_vm8, %v1893_v13  ;;  %vm3229_vm8 = vnez %v3110_v0 }
  0x73   : > { %845 = vmatprep.mubr.f32.mxu0 %v778_v12 }
  0x74   : > { %772 = vmatmul.mubr.f32.vlgmr.msra.gmra.mrb[0].mxu1 %v635_v19 }
  0x75   : > { %1744 = vmatpush3.bf16.msk.msra.mxu1 %vm3225_vm15, %v1893_v13  ;;  %915 = vmatprep.mubr.f32.mxu1 %v780_v5  ;;  %vm3228_vm15 = vnez %v3105_v55 }
  0x76   : > { %1746 = vmatprep.subr.msk.bf16.mxu1 %vm2021_vm5, %v1893_v13  ;;  %1716 = vmatpush3.bf16.msk.msra.mxu0 %vm2044_vm10, %v1893_v13  ;;  %vm3230_vm5 = vnez %v3121_v16  ;;  %vm3231_vm10 = vnez %v3115_v2 }
  0x77   : > { %1718 = vmatprep.subr.msk.bf16.mxu0 %vm3226_vm11, %v1893_v13  ;;  %vm3232_vm11 = vnez %v3127_v17 }
  0x79   : > { %1748 = vmatpush3.bf16.msk.msra.mxu1 %vm3227_vm9, %v1893_v13  ;;  %vm3233_vm9 = vnez %v3133_v29 }
  0x7a   : > { %1750 = vmatprep.subr.msk.bf16.mxu1 %vm3228_vm15, %v1893_v13  ;;  %1720 = vmatpush3.bf16.msk.msra.mxu0 %vm3229_vm8, %v1893_v13  ;;  %vm3234_vm15 = vnez %v3142_v42  ;;  %vm3235_vm8 = vnez %v3139_v36 }
  0x7b   : > { %1722 = vmatprep.subr.msk.bf16.mxu0 %vm3230_vm5, %v1893_v13  ;;  %vm3236_vm5 = vnez %v3144_v50 }
  0x7d   : > { %1752 = vmatpush3.bf16.msk.msra.mxu1 %vm3231_vm10, %v1893_v13 }
  0x7e   : > { %1754 = vmatprep.subr.msk.bf16.mxu1 %vm3232_vm11, %v1893_v13  ;;  %1724 = vmatpush3.bf16.msk.msra.mxu0 %vm3233_vm9, %v1893_v13 }
  0x7f   : > { %1726 = vmatprep.subr.msk.bf16.mxu0 %vm3234_vm15, %v1893_v13 }
  0x81   : > { %1756 = vmatpush3.bf16.msk.msra.mxu1 %vm3235_vm8, %v1893_v13 }
  0x82   : > { %1758 = vmatprep.subr.msk.bf16.mxu1 %vm3236_vm5, %v1893_v13  ;;  %1728 = vmatpush3.bf16.msk.msra.mxu0 %vm2553_vm4, %v1893_v13  ;;  %vm3237_vm5 = vnez %v3174_v47  ;;  %vm3238_vm4 = vnez %v3168_v46 }
  0x83   : > { %1730 = vmatprep.subr.msk.bf16.mxu0 %vm2571_vm13, %v1893_v13  ;;  %vm3239_vm13 = vnez %v3180_v48 }
  0x85   : > { %1760 = vmatpush3.bf16.msk.msra.mxu1 %vm2564_vm0, %v1893_v13  ;;  %vm3240_vm0 = vnez %v3186_v56 }
  0x86   : > { %1762 = vmatprep.subr.msk.bf16.mxu1 %vm2590_vm6, %v1893_v13  ;;  %1732 = vmatpush3.bf16.msk.msra.mxu0 %vm2609_vm2, %v1893_v13  ;;  %vm3241_vm6 = vnez %v3198_v58 }
  0x87   : > { %1734 = vmatprep.subr.msk.bf16.mxu0 %vm3237_vm5, %v1893_v13  ;;  %vm3242_vm5 = vnez %v3192_v57 }
  0x89   : > { %1764 = vmatpush3.bf16.msk.msra.mxu1 %vm3238_vm4, %v1893_v13  ;;  %vm3243_vm4 = vnez %v3204_v61 }
  0x8a   : > { %1766 = vmatprep.subr.msk.bf16.mxu1 %vm3239_vm13, %v1893_v13  ;;  %1736 = vmatpush3.bf16.msk.msra.mxu0 %vm3240_vm0, %v1893_v13 }
  0x8b   : > { %1738 = vmatprep.subr.msk.bf16.mxu0 %vm3241_vm6, %v1893_v13 }
  0x8d   : > { %1768 = vmatpush3.bf16.msk.msra.mxu1 %vm3242_vm5, %v1893_v13 }
  0x8e   : > { %1770 = vmatprep.subr.msk.bf16.mxu1 %vm3243_vm4, %v1893_v13  ;;  %1740 = vmatpush3.bf16.msk.msra.mxu0 %vm2771_vm3, %v1893_v13  ;;  %vm3245_vm3 = vnez %v3091_v21  ;;  %vm3251_vm4 = vnez %v3110_v0 }
  0x8f   : > { %1774 = vmatprep.subr.msk.bf16.mxu0 %vm3219_vm7, %v1893_v13  ;;  %vm3244_vm7 = vnez %v3093_v24 }
  0x91   : > { %1772 = vmatpush3.bf16.msk.msra.mxu1 %vm2802_vm1, %v1893_v13  ;;  %846 = vmatmul.mubr.f32.vlgmr.msra.gmra.mrb[2].mxu0 %v777_v8  ;;  %vm3246_vm1 = vnez %v3095_v31 }
  0x92   : > { %1806 = vmatprep.subr.msk.bf16.mxu1 %vm3222_vm14, %v1893_v13  ;;  %1776 = vmatpush3.bf16.msk.msra.mxu0 %vm3223_vm12, %v1893_v13  ;;  %vm3247_vm14 = vnez %v3097_v35  ;;  %vm3248_vm12 = vnez %v3101_v49 }
  0x93   : > { %1778 = vmatprep.subr.msk.bf16.mxu0 %vm3244_vm7, %v1893_v13  ;;  %989 = vmatprep.mubr.f32.mxu0 %v922_v20  ;;  %vm3249_vm7 = vnez %v3099_v40 }
  0x94   : > { %916 = vmatmul.mubr.f32.vlgmr.msra.gmra.mrb[2].mxu1 %v779_v23 }
  0x95   : > { %1808 = vmatpush3.bf16.msk.msra.mxu1 %vm3245_vm3, %v1893_v13  ;;  %1059 = vmatprep.mubr.f32.mxu1 %v924_v25  ;;  %vm3250_vm3 = vnez %v3105_v55 }
  0x96   : > { %1810 = vmatprep.subr.msk.bf16.mxu1 %vm3246_vm1, %v1893_v13  ;;  %1780 = vmatpush3.bf16.msk.msra.mxu0 %vm3247_vm14, %v1893_v13  ;;  %vm3252_vm1 = vnez %v3121_v16  ;;  %vm3259_vm14 = vnez %v3168_v46 }
  0x97   : > { %1782 = vmatprep.subr.msk.bf16.mxu0 %vm3248_vm12, %v1893_v13 }
  0x99   : > { %1812 = vmatpush3.bf16.msk.msra.mxu1 %vm3249_vm7, %v1893_v13 }
  0x9a   : > { %1814 = vmatprep.subr.msk.bf16.mxu1 %vm3250_vm3, %v1893_v13  ;;  %1784 = vmatpush3.bf16.msk.msra.mxu0 %vm3251_vm4, %v1893_v13  ;;  %vm3253_vm4 = vnez %v3144_v50 }
  0x9b   : > { %1786 = vmatprep.subr.msk.bf16.mxu0 %vm3252_vm1, %v1893_v13 }
  0x9d   : > { %1816 = vmatpush3.bf16.msk.msra.mxu1 %vm3231_vm10, %v1893_v13  ;;  %vm3254_vm10 = vnez %v3146_v53 }
  0x9e   : > { %1818 = vmatprep.subr.msk.bf16.mxu1 %vm3232_vm11, %v1893_v13  ;;  %1788 = vmatpush3.bf16.msk.msra.mxu0 %vm3233_vm9, %v1893_v13  ;;  %vm3255_vm11 = vnez %v3150_v54  ;;  %vm3256_vm9 = vnez %v3148_v1 }
  0x9f   : > { %1790 = vmatprep.subr.msk.bf16.mxu0 %vm3234_vm15, %v1893_v13  ;;  %vm3257_vm15 = vnez %v3156_v22 }
  0xa1   : > { %1820 = vmatpush3.bf16.msk.msra.mxu1 %vm3235_vm8, %v1893_v13  ;;  %vm3258_vm8 = vnez %v3174_v47 }
  0xa2   : > { %1822 = vmatprep.subr.msk.bf16.mxu1 %vm3253_vm4, %v1893_v13  ;;  %1792 = vmatpush3.bf16.msk.msra.mxu0 %vm3254_vm10, %v1893_v13 }
  0xa3   : > { %1794 = vmatprep.subr.msk.bf16.mxu0 %vm3255_vm11, %v1893_v13 }
  0xa5   : > { %1824 = vmatpush3.bf16.msk.msra.mxu1 %vm3256_vm9, %v1893_v13 }
  0xa6   : > { %1826 = vmatprep.subr.msk.bf16.mxu1 %vm3257_vm15, %v1893_v13  ;;  %1796 = vmatpush3.bf16.msk.msra.mxu0 %vm2609_vm2, %v1893_v13  ;;  %vm3260_vm2 = vnez %v3204_v61 }
  0xa7   : > { %1798 = vmatprep.subr.msk.bf16.mxu0 %vm3258_vm8, %v1893_v13 }
  0xa9   : > { %1828 = vmatpush3.bf16.msk.msra.mxu1 %vm3259_vm14, %v1893_v13 }
  0xaa   : > { %1830 = vmatprep.subr.msk.bf16.mxu1 %vm3239_vm13, %v1893_v13  ;;  %1800 = vmatpush3.bf16.msk.msra.mxu0 %vm3240_vm0, %v1893_v13  ;;  %vm3261_vm13 = vnez %v3212_v6  ;;  %vm3262_vm0 = vnez %v3221_v14 }
  0xab   : > { %1802 = vmatprep.subr.msk.bf16.mxu0 %vm3241_vm6, %v1893_v13  ;;  %vm218_vm6 = vcmask 130048  }
  0xac   : > { %219 = vst.msk [vmem:[#allocation2] sm:$0xff] %vm218_vm6, %v1894_v18 }
  0xad   : > { %1832 = vmatpush3.bf16.msk.msra.mxu1 %vm3242_vm5, %v1893_v13  ;;  %vm1090_vm5 = vcmask 0  }
  0xae   : > { %1834 = vmatprep.subr.msk.bf16.mxu1 %vm3260_vm2, %v1893_v13  ;;  %1804 = vmatpush3.bf16.msk.msra.mxu0 %vm3261_vm13, %v1893_v13 }
  0xb1   : > { %1836 = vmatpush3.bf16.msk.msra.mxu1 %vm3262_vm0, %v1893_v13  ;;  %990 = vmatmul.mubr.f32.vlgmr.msra.gmra.mrb[4].mxu0 %v921_v11 }
  0xb3   : > { %v1071_v43 = vld [vmem:[#allocation2] sm:$0xff] }
  0xb4   : > { %1060 = vmatmul.mubr.f32.vlgmr.msra.gmra.mrb[4].mxu1 %v923_v15 }
 0x143   : > { %v1467_v21 = vpop.f32.mrb[0].mxu0 }
 0x144   : > { %v1468_v24 = vpop.f32.mrb[1].mxu0 }
 0x145   : > { %v1469_v31 = vadd.f32 %v1468_v24, %v1467_v21 }
 0x147   : > { %v1502_v35 = vpop.f32.mrb[0].mxu1 }
 0x148   : > { %v1503_v40 = vpop.f32.mrb[1].mxu1 }
 0x149   : > { %v1504_v49 = vadd.f32 %v1503_v40, %v1502_v35 }
 0x14b   : > { %v774_v55 = vadd.f32 %v1504_v49, %v1469_v31 }
 0x164   : > { %v1537_v0 = vpop.f32.mrb[2].mxu0 }
 0x165   : > { %v1538_v2 = vpop.f32.mrb[3].mxu0 }
 0x166   : > { %v1539_v16 = vadd.f32 %v1538_v2, %v1537_v0 }
 0x167   : > { %v1572_v17 = vpop.f32.mrb[2].mxu1 }
 0x168   : > { %v1573_v26 = vpop.f32.mrb[3].mxu1 }
 0x169   : > { %v1574_v27 = vadd.f32 %v1573_v26, %v1572_v17 }
 0x16b   : > { %v918_v13 = vadd.f32 %v1574_v27, %v1539_v16 }
 0x16d   : > { %v1065_v28 = vmax.f32 %v918_v13, 1e-16 }
 0x16f   : > { %1865 = vrsqrt.f32 %v1065_v28 }
 0x179   : > { %v1866_v29 = vpop.eup %1865 }
 0x17a   : > { %v1067_v30 = vmul.f32 %v1866_v29, %v774_v55 }
 0x184   : > { %v1607_v32 = vpop.f32.mrb[4].mxu0 }
 0x185   : > { %v1608_v33 = vpop.f32.mrb[5].mxu0 }
 0x186   : > { %v1609_v34 = vadd.f32 %v1608_v33, %v1607_v32 }
 0x187   : > { %v1642_v36 = vpop.f32.mrb[4].mxu1 }
 0x188   : > { %v1643_v37 = vpop.f32.mrb[5].mxu1 }
 0x189   : > { %v1644_v38 = vadd.f32 %v1643_v37, %v1642_v36 }
 0x18b   : > { %v1062_v39 = vadd.f32 %v1644_v38, %v1609_v34 }
 0x18d   : > { %v1068_v41 = vmax.f32 %v1062_v39, 1e-16 }
 0x18f   : > { %1867 = vrsqrt.f32 %v1068_v41 }
 0x199   : > { %v1868_v42 = vpop.eup %1867 }
 0x19a   : > { %v1070_v44 = vmul.f32 %v1868_v42, %v1067_v30 }
 0x19c   : > { %v1072_v50 = vadd.f32 %v1071_v43, %v1070_v44 }
 0x19e   : > { %1074 = vst.msk [vmem:[#allocation2] sm:$0xff] %vm218_vm6, %v1072_v50 }
 0x1a5   : > { %v1078_v51 = vld [vmem:[#allocation2] sm:$0xff] }
 0x1a6   : > { %v1079_v52 = vsel %vm218_vm6, %v1078_v51, 0.0 }
 0x1a7   : > { %1080 = vadd.xlane.f32.xlu0 %v1079_v52 }
 0x234   : > { %v1081_v53 = vpop.xlane.xlu0 %1080 }
 0x235   : > { %v1082_v1 = vrot.slane %v1081_v53, 4 }
 0x237   : > { %v1083_v54 = vadd.f32 %v1082_v1, %v1081_v53 }
 0x239   : > { %v1084_v22 = vrot.slane %v1083_v54, 2 }
 0x23b   : > { %v1085_v45 = vadd.f32 %v1084_v22, %v1083_v54 }
 0x23d   : > { %v1086_v46 = vrot.slane %v1085_v45, 1 }
 0x23f   : > { %v1087_v47 = vadd.f32 %v1086_v46, %v1085_v45 }
 0x241   : > { %1837 = vpush %v1087_v47 }
 0x272   : > { %s1838_s25 = spop %1837 }
 0x273   : > { %v1089_v48 = vstv %s1838_s25 }
 0x274   : > { %1091 = vst.msk [vmem:[%s213_s24] sm:$0x1] %vm1090_vm5, %v1089_v48 }
 0x275 PF: > { %s12_s11 = sadd.s32 1, %s1891_s11   ;;  %s3263_s9 = smov %s1887_s10 }
 0x276   : > { %p9_p6 = scmp.ge.s32.totalorder %s12_s11, 4   ;;  %s3264_s10 = smov %s3266_s12 }
 0x278   :  { %11 = sbr.rel (!%p9_p6) target bundleno = 2 (0x2), region = 69 }

</bundles_post_ra>
